<compile_context>
chip_gen: v6e
topology: v6e:2x2x1
jax: 0.10.0
libtpu: 0.0.40
codegen_flags: <defaults>
</compile_context>

<pallas_src>
import jax
import jax.numpy as jnp
from jax import lax
from jax.experimental import pallas as pl
from jax.experimental.pallas import tpu as pltpu


def project_attention_kernel(x_ref, q_ref,
                             wi_ref, bi_ref,
                             wt_ref, bt_ref,
                             wl_ref, blc_ref,
                             att_ref):
    # x_ref:   (L, D_img) bf16   image-feature rows of the current batch (streamed)
    # q_ref:   (B, D_txt) f32    question embeddings (resident)
    # wi_ref:  (D_img, H) bf16   Fa_image weight (resident)
    # bi_ref:  (1, H)     f32    Fa_image bias
    # wt_ref:  (D_txt, H) bf16   Fa_txt weight (resident)
    # bt_ref:  (1, H)     f32    Fa_txt bias
    # wl_ref:  (1, H)     f32    lc weight as a row vector
    # blc_ref: (1, 1)     f32    lc bias (SMEM scalar)
    # att_ref: (1, L)     f32    lane-dense per-location attention for this batch
    b = pl.program_id(0)

    # Fa_image: Linear + ReLU on the MXU (bf16 operands, f32 accumulate).
    image_fa = jnp.maximum(
        jnp.dot(x_ref[...], wi_ref[...], preferred_element_type=jnp.float32)
        + bi_ref[...], 0.0)                                          # (L, H) f32

    # Fa_txt for this batch's question row only (runs once per batch step).
    q_row = q_ref[pl.ds(b, 1), :].astype(jnp.bfloat16)               # (1, D_txt)
    question_fa = jnp.maximum(
        jnp.dot(q_row, wt_ref[...], preferred_element_type=jnp.float32)
        + bt_ref[...], 0.0)                                          # (1, H) f32

    # Exact fold: (image_fa * question_fa) @ w_lc == image_fa . (question_fa * w_lc).
    # Kept in f32 (bf16 only feeds the two MXU matmuls above).
    v = question_fa * wl_ref[...]                                    # (1, H) f32
    raw = lax.dot_general(v, image_fa,
                          dimension_numbers=(((1,), (1,)), ((), ())),
                          preferred_element_type=jnp.float32)        # (1, L) lane-dense
    raw = raw + blc_ref[0, 0]

    # Softmax over locations — all lane-axis work on a dense row.
    m = jnp.max(raw, axis=-1, keepdims=True)
    e = jnp.exp(raw - m)
    att_ref[...] = e / jnp.sum(e, axis=-1, keepdims=True)


def project_attention_forward(image_feat, question_embedding, params):
    B, L, D_img = image_feat.shape
    _, D_txt = question_embedding.shape
    H = params["w_img"].shape[1]

    # bf16 MXU operands (f32 accumulation / VPU / softmax kept inside the kernel).
    x_bf16 = image_feat.astype(jnp.bfloat16)
    w_img = params["w_img"].astype(jnp.bfloat16)
    w_txt = params["w_txt"].astype(jnp.bfloat16)
    wl_row = params["w_lc"].reshape(1, H).astype(jnp.float32)   # (H,1) column -> (1,H) row

    bytes_accessed = (2 * (x_bf16.size + w_img.size + w_txt.size)
                      + 4 * (question_embedding.size + params["b_img"].size
                             + params["b_txt"].size + wl_row.size
                             + params["b_lc"].size + B * L))
    cost = pl.CostEstimate(
        flops=2 * B * L * D_img * H + 2 * B * D_txt * H + 2 * B * L * H,
        transcendentals=B * L,
        bytes_accessed=bytes_accessed,
    )

    att = pl.pallas_call(
        project_attention_kernel,
        out_shape=jax.ShapeDtypeStruct((B, 1, L), jnp.float32),
        grid=(B,),
        in_specs=[
            # Streamed per grid step (default double-buffered).
            pl.BlockSpec((None, L, D_img), lambda b: (b, 0, 0)),          # image feat rows
            # Resident across all grid steps (constant index_map).
            pl.BlockSpec((B, D_txt), lambda b: (0, 0)),                   # question emb (f32)
            pl.BlockSpec((D_img, H), lambda b: (0, 0)),                   # W_img (bf16)
            pl.BlockSpec((1, H), lambda b: (0, 0)),                       # b_img
            pl.BlockSpec((D_txt, H), lambda b: (0, 0)),                   # W_txt (bf16)
            pl.BlockSpec((1, H), lambda b: (0, 0)),                       # b_txt
            pl.BlockSpec((1, H), lambda b: (0, 0)),                       # w_lc row
            pl.BlockSpec(memory_space=pltpu.MemorySpace.SMEM),            # b_lc scalar
        ],
        out_specs=pl.BlockSpec((None, 1, L), lambda b: (b, 0, 0)),        # lane-dense row
        compiler_params=pltpu.CompilerParams(
            dimension_semantics=("parallel",),      # batch steps independent -> both v7x TCs
            vmem_limit_bytes=32 * 1024 * 1024,      # above v5e's 16 MiB scoped default
        ),
        cost_estimate=cost,
    )(x_bf16, question_embedding,
      w_img, params["b_img"],
      w_txt, params["b_txt"],
      wl_row, params["b_lc"])

    # expand_as(image_feat): pure broadcast of attention over the feature dim, done by
    # XLA so the kernel never writes a D_img-times-redundant output to HBM.
    return jnp.broadcast_to(jnp.transpose(att, (0, 2, 1)), (B, L, D_img))


def reference_forward(image_feat, question_embedding, params, mixed=False):
    if mixed:
        # Same bf16 casts as the kernel's MXU operands, f32 everywhere else.
        image_fa = jnp.maximum(
            jnp.dot(image_feat.astype(jnp.bfloat16), params["w_img"].astype(jnp.bfloat16),
                    preferred_element_type=jnp.float32) + params["b_img"][0], 0.0)
        question_fa = jnp.maximum(
            jnp.dot(question_embedding.astype(jnp.bfloat16), params["w_txt"].astype(jnp.bfloat16),
                    preferred_element_type=jnp.float32) + params["b_txt"][0], 0.0)
    else:
        image_fa = jnp.maximum(image_feat @ params["w_img"] + params["b_img"][0], 0.0)
        question_fa = jnp.maximum(question_embedding @ params["w_txt"] + params["b_txt"][0], 0.0)
    joint = image_fa * question_fa[:, None, :]
    raw = joint @ params["w_lc"] + params["b_lc"][0]                 # (B, L, 1)
    att = jax.nn.softmax(raw, axis=1)
    return jnp.broadcast_to(att, image_feat.shape)


if __name__ == "__main__":
    # Small shapes consistent with the module's forward.
    B, L = 2, 16                  # batch, num_location
    D_IMG, D_TXT, H = 32, 24, 32  # image_feat_dim, txt_rnn_embeding_dim, hidden_size

    key = jax.random.PRNGKey(0)
    k = jax.random.split(key, 8)

    image_feat = jax.random.normal(k[0], (B, L, D_IMG), dtype=jnp.float32)
    question_embedding = jax.random.normal(k[1], (B, D_TXT), dtype=jnp.float32)

    params = {
        "w_img": 0.1 * jax.random.normal(k[2], (D_IMG, H), dtype=jnp.float32),
        "b_img": 0.1 * jax.random.normal(k[3], (1, H), dtype=jnp.float32),
        "w_txt": 0.1 * jax.random.normal(k[4], (D_TXT, H), dtype=jnp.float32),
        "b_txt": 0.1 * jax.random.normal(k[5], (1, H), dtype=jnp.float32),
        "w_lc":  0.1 * jax.random.normal(k[6], (H, 1), dtype=jnp.float32),
        "b_lc":  0.1 * jax.random.normal(k[7], (1, 1), dtype=jnp.float32),
    }

    out = project_attention_forward(image_feat, question_embedding, params)
    out = jax.block_until_ready(out)
    assert out.shape == image_feat.shape

    # Tight check against a reference using the same bf16 MXU operands.
    ref_mixed = reference_forward(image_feat, question_embedding, params, mixed=True)
    assert jnp.allclose(out, ref_mixed, atol=5e-4, rtol=5e-4), "mismatch vs mixed-precision reference"

    # Loose check against the pure-f32 reference (bounds the bf16 cast error).
    ref_f32 = reference_forward(image_feat, question_embedding, params, mixed=False)
    assert jnp.allclose(out, ref_f32, atol=1e-2, rtol=1e-2), "mismatch vs f32 reference"

    print("KERNEL_OK")
</pallas_src>

<mosaic_0001>
module attributes {stable_mosaic.version = 11 : i64} {
  func.func @project_attention_kernel(%arg0: i32, %arg1: memref<1x16x32xbf16, #tpu.memory_space<vmem>>, %arg2: memref<2x24xf32, #tpu.memory_space<vmem>>, %arg3: memref<32x32xbf16, #tpu.memory_space<vmem>>, %arg4: memref<1x32xf32, #tpu.memory_space<vmem>>, %arg5: memref<24x32xbf16, #tpu.memory_space<vmem>>, %arg6: memref<1x32xf32, #tpu.memory_space<vmem>>, %arg7: memref<1x32xf32, #tpu.memory_space<vmem>>, %arg8: memref<1x1xf32, #tpu.memory_space<smem>>, %arg9: memref<1x1x16xf32, #tpu.memory_space<vmem>>) attributes {dimension_semantics = [#tpu.dimension_semantics<parallel>], iteration_bounds = array<i64: 2>, scalar_prefetch = 0 : i64, scratch_operands = 0 : i64, tpu.core_type = #tpu.core_type<tc>, window_params = [{transform_indices = @transform_0, window_bounds = array<i64: 1, 16, 32>}, {pipeline_mode = #tpu.pipeline_mode<synchronous>, transform_indices = @transform_1, window_bounds = array<i64: 2, 24>}, {pipeline_mode = #tpu.pipeline_mode<synchronous>, transform_indices = @transform_2, window_bounds = array<i64: 32, 32>}, {pipeline_mode = #tpu.pipeline_mode<synchronous>, transform_indices = @transform_3, window_bounds = array<i64: 1, 32>}, {pipeline_mode = #tpu.pipeline_mode<synchronous>, transform_indices = @transform_4, window_bounds = array<i64: 24, 32>}, {pipeline_mode = #tpu.pipeline_mode<synchronous>, transform_indices = @transform_5, window_bounds = array<i64: 1, 32>}, {pipeline_mode = #tpu.pipeline_mode<synchronous>, transform_indices = @transform_6, window_bounds = array<i64: 1, 32>}, {transform_indices = @transform_7, window_bounds = array<i64: 1, 1>}, {transform_indices = @transform_8, window_bounds = array<i64: 1, 1, 16>}]} {
    %c0 = arith.constant 0 : index
    %c0_0 = arith.constant 0 : index
    %c0_1 = arith.constant 0 : index
    %0 = vector.load %arg1[%c0, %c0_0, %c0_1] : memref<1x16x32xbf16, #tpu.memory_space<vmem>>, vector<1x16x32xbf16>
    %1 = vector.shape_cast %0 : vector<1x16x32xbf16> to vector<16x32xbf16>
    %c0_2 = arith.constant 0 : index
    %c0_3 = arith.constant 0 : index
    %2 = vector.load %arg3[%c0_2, %c0_3] : memref<32x32xbf16, #tpu.memory_space<vmem>>, vector<32x32xbf16>
    %cst = arith.constant dense<0.000000e+00> : vector<16x32xf32>
    %3 = tpu.matmul %1, %2, %cst {dimension_numbers = #tpu.dot_dimension_numbers<[1], [0], [0], [1], [0, 0, 1, 1], [], []>} : vector<16x32xbf16>, vector<32x32xbf16>, vector<16x32xf32> -> vector<16x32xf32>
    %c0_4 = arith.constant 0 : index
    %c0_5 = arith.constant 0 : index
    %4 = vector.load %arg4[%c0_4, %c0_5] : memref<1x32xf32, #tpu.memory_space<vmem>>, vector<1x32xf32>
    %5 = vector.broadcast %4 : vector<1x32xf32> to vector<16x32xf32>
    %6 = arith.addf %3, %5 : vector<16x32xf32>
    %cst_6 = arith.constant 0.000000e+00 : f32
    %7 = vector.broadcast %cst_6 : f32 to vector<16x32xf32>
    %8 = arith.maximumf %6, %7 : vector<16x32xf32>
    %9 = arith.index_cast %arg0 : i32 to index
    %c0_7 = arith.constant 0 : index
    %10 = vector.load %arg2[%9, %c0_7] : memref<2x24xf32, #tpu.memory_space<vmem>>, vector<1x24xf32>
    %11 = arith.truncf %10 : vector<1x24xf32> to vector<1x24xbf16>
    %c0_8 = arith.constant 0 : index
    %c0_9 = arith.constant 0 : index
    %12 = vector.load %arg5[%c0_8, %c0_9] : memref<24x32xbf16, #tpu.memory_space<vmem>>, vector<24x32xbf16>
    %cst_10 = arith.constant dense<0.000000e+00> : vector<1x32xf32>
    %13 = tpu.matmul %11, %12, %cst_10 {dimension_numbers = #tpu.dot_dimension_numbers<[1], [0], [0], [1], [0, 0, 1, 1], [], []>} : vector<1x24xbf16>, vector<24x32xbf16>, vector<1x32xf32> -> vector<1x32xf32>
    %c0_11 = arith.constant 0 : index
    %c0_12 = arith.constant 0 : index
    %14 = vector.load %arg6[%c0_11, %c0_12] : memref<1x32xf32, #tpu.memory_space<vmem>>, vector<1x32xf32>
    %15 = arith.addf %13, %14 : vector<1x32xf32>
    %cst_13 = arith.constant 0.000000e+00 : f32
    %16 = vector.broadcast %cst_13 : f32 to vector<1x32xf32>
    %17 = arith.maximumf %15, %16 : vector<1x32xf32>
    %c0_14 = arith.constant 0 : index
    %c0_15 = arith.constant 0 : index
    %18 = vector.load %arg7[%c0_14, %c0_15] : memref<1x32xf32, #tpu.memory_space<vmem>>, vector<1x32xf32>
    %19 = arith.mulf %17, %18 : vector<1x32xf32>
    %cst_16 = arith.constant dense<0.000000e+00> : vector<1x16xf32>
    %20 = tpu.matmul %19, %8, %cst_16 {dimension_numbers = #tpu.dot_dimension_numbers<[1], [1], [0], [0], [0, 0, 1, 0], [], []>} : vector<1x32xf32>, vector<16x32xf32>, vector<1x16xf32> -> vector<1x16xf32>
    %c0_17 = arith.constant 0 : index
    %c0_18 = arith.constant 0 : index
    %21 = memref.load %arg8[%c0_17, %c0_18] : memref<1x1xf32, #tpu.memory_space<smem>>
    %22 = vector.broadcast %21 : f32 to vector<1x16xf32>
    %23 = arith.addf %20, %22 : vector<1x16xf32>
    %cst_19 = arith.constant dense<0xFF800000> : vector<1xf32>
    %24 = vector.multi_reduction <maximumf>, %23, %cst_19 [1] : vector<1x16xf32> to vector<1xf32>
    %25 = vector.shape_cast %24 : vector<1xf32> to vector<1x1xf32>
    %26 = vector.broadcast %25 : vector<1x1xf32> to vector<1x16xf32>
    %27 = arith.subf %23, %26 : vector<1x16xf32>
    %28 = math.exp %27 : vector<1x16xf32>
    %cst_20 = arith.constant dense<0.000000e+00> : vector<1xf32>
    %29 = vector.multi_reduction <add>, %28, %cst_20 [1] : vector<1x16xf32> to vector<1xf32>
    %30 = vector.shape_cast %29 : vector<1xf32> to vector<1x1xf32>
    %31 = vector.broadcast %30 : vector<1x1xf32> to vector<1x16xf32>
    %32 = arith.divf %28, %31 : vector<1x16xf32>
    %c0_21 = arith.constant 0 : index
    %c0_22 = arith.constant 0 : index
    %c0_23 = arith.constant 0 : index
    %33 = vector.load %arg9[%c0_21, %c0_22, %c0_23] : memref<1x1x16xf32, #tpu.memory_space<vmem>>, vector<1x1x16xf32>
    %34 = vector.shape_cast %33 : vector<1x1x16xf32> to vector<1x16xf32>
    %35 = vector.shape_cast %32 : vector<1x16xf32> to vector<1x1x16xf32>
    tpu.vector_store %arg9[%c0_21, %c0_22, %c0_23], %35 {strides = array<i32>} : memref<1x1x16xf32, #tpu.memory_space<vmem>>, vector<1x1x16xf32>,
    return
  }
  func.func @transform_0(%arg0: i32) -> (i32, i32, i32) {
    %c0_i32 = arith.constant 0 : i32
    %c0_i32_0 = arith.constant 0 : i32
    %c0_i32_1 = arith.constant 0 : i32
    return %arg0, %c0_i32, %c0_i32_0 : i32, i32, i32
  }
  func.func @transform_1(%arg0: i32) -> (i32, i32) {
    %c0_i32 = arith.constant 0 : i32
    %c0_i32_0 = arith.constant 0 : i32
    %c0_i32_1 = arith.constant 0 : i32
    return %c0_i32, %c0_i32_0 : i32, i32
  }
  func.func @transform_2(%arg0: i32) -> (i32, i32) {
    %c0_i32 = arith.constant 0 : i32
    %c0_i32_0 = arith.constant 0 : i32
    %c0_i32_1 = arith.constant 0 : i32
    return %c0_i32, %c0_i32_0 : i32, i32
  }
  func.func @transform_3(%arg0: i32) -> (i32, i32) {
    %c0_i32 = arith.constant 0 : i32
    %c0_i32_0 = arith.constant 0 : i32
    %c0_i32_1 = arith.constant 0 : i32
    return %c0_i32, %c0_i32_0 : i32, i32
  }
  func.func @transform_4(%arg0: i32) -> (i32, i32) {
    %c0_i32 = arith.constant 0 : i32
    %c0_i32_0 = arith.constant 0 : i32
    %c0_i32_1 = arith.constant 0 : i32
    return %c0_i32, %c0_i32_0 : i32, i32
  }
  func.func @transform_5(%arg0: i32) -> (i32, i32) {
    %c0_i32 = arith.constant 0 : i32
    %c0_i32_0 = arith.constant 0 : i32
    %c0_i32_1 = arith.constant 0 : i32
    return %c0_i32, %c0_i32_0 : i32, i32
  }
  func.func @transform_6(%arg0: i32) -> (i32, i32) {
    %c0_i32 = arith.constant 0 : i32
    %c0_i32_0 = arith.constant 0 : i32
    %c0_i32_1 = arith.constant 0 : i32
    return %c0_i32, %c0_i32_0 : i32, i32
  }
  func.func @transform_7(%arg0: i32) -> (i32, i32) {
    %c0_i32 = arith.constant 0 : i32
    %c0_i32_0 = arith.constant 0 : i32
    %c0_i32_1 = arith.constant 0 : i32
    return %c0_i32, %c0_i32_0 : i32, i32
  }
  func.func @transform_8(%arg0: i32) -> (i32, i32, i32) {
    %c0_i32 = arith.constant 0 : i32
    %c0_i32_0 = arith.constant 0 : i32
    %c0_i32_1 = arith.constant 0 : i32
    return %arg0, %c0_i32, %c0_i32_0 : i32, i32, i32
  }
}

</mosaic_0001>

<bundles_post_ra>
// kernel: tpu_custom_call.1
= control target key start
LH: loop header
LB: loop body
LE: loop exit
PB: predicated region body
PF: predicated region fallthrough
CT: control target
= control target key end

     0   :  { %s1243_s0 = inlined_call_operand.hbm [shape: bf16[2,16,32], index: 0, kind: input, shape index: {}]   ;;  %s1244_s1 = inlined_call_operand.vmem [shape: f32[2,24], index: 1, kind: input, shape index: {}]   ;;  %s1245_s2 = inlined_call_operand.hbm [shape: bf16[32,32], index: 2, kind: input, shape index: {}]   ;;  %s1246_s3 = inlined_call_operand.vmem [shape: f32[1,32], index: 3, kind: input, shape index: {}]   ;;  %s1247_s4 = inlined_call_operand.hbm [shape: bf16[24,32], index: 4, kind: input, shape index: {}]   ;;  %s1248_s5 = inlined_call_operand.vmem [shape: f32[1,32], index: 5, kind: input, shape index: {}]   ;;  %s1249_s6 = inlined_call_operand.vmem [shape: f32[1,32], index: 6, kind: input, shape index: {}]   ;;  %s1250_s7 = inlined_call_operand.<no memory space> [shape: f32[1,1], index: 7, kind: input, shape index: {}]   ;;  %s1251_s8 = inlined_call_operand.hbm [shape: f32[2,1,16], index: 8, kind: output, shape index: {}]  }
   0x1   :  { %1258 = sst [smem:[#allocation13_spill]] %s1245_s2 }
   0x2   :  { %13 = sst [smem:[#allocation2]] %s1250_s7 }
   0x3   :  { %14 = vsyncpa [#allocation4], 0 }
   0x4   :  { %16 = vsyncpa [#allocation4 + $0x1], 0 }
   0x5   :  { %17 = vsyncpa [#allocation7], 0 }
   0x6   :  { %18 = vsyncpa [#allocation5], 0 }
   0x7   :  { %20 = vsyncpa [#allocation5 + $0x1], 0  ;;  %s1036_s29 = smov 0   ;;  %s1038_s30 = smov 0  }
   0x8   :  { %s1040_s9 = smov 0   ;;  %s1042_s10 = smov 0  }
   0x9 LB: > { %s1057_s7 = sadd.s32 4294967295, %s978_s10   ;;  %s691_s11 = sadd.s32 4294967294, %s978_s10   ;;  %s978_s10 = sphi %s1042_s10, %s1278_s10   ;;  %s974_s9 = sphi %s1040_s9, %s1277_s9   ;;  %s970_s30 = sphi %s1038_s30, %s1276_s30   ;;  %s966_s29 = sphi %s1036_s29, %s1275_s29  }
   0xa   : > { %p46_p0 = scmp.ne.s32.totalorder %s970_s30, %s966_s29  ;;  %p1253_p1 = scmp.eq.s32.totalorder %s1057_s7, 0 }
   0xb   : > { %p217_p2 = scmp.eq.s32.totalorder %s1057_s7, 1  ;;  %p223_p3 = scmp.eq.s32.totalorder %s691_s11, 1 }
   0xc   : > { %p1066_p4 = por %p1253_p1, %p46_p0  ;;  %p692_p5 = scmp.ge.s32.totalorder %s978_s10, 1 }
   0xd   : > { %p1071_p6 = por %p223_p3, %p46_p0  ;;  %p230_p7 = scmp.lt.s32.totalorder %s978_s10, 3 }
   0xe   : > { %s1259_s12 = scalar_select %p1066_p4, 1, 0 }
   0xf   : > { %s1260_s13 = scalar_select %p1071_p6, 1, 0 }
  0x10   : > { %p1076_p8 = pnand %p692_p5, %p230_p7  ;;  %s980_s15 = smov [#allocation6]  }
  0x11   : > { %s245_s16 = sshll.u32 %s980_s15, 4  ;;  %s981_s18 = smov [#allocation8]   ;;  %s246_s16 = int_to_ptr.vmem [resolvable:$true] %s245_s16 }
  0x12   : > { %s1261_s14 = scalar_select %p1076_p8, 1, 0 }
  0x13   : > { %p762_p9 = pneg %p1076_p8  ;;  %s261_s19 = sshll.u32 %s981_s18, 4  ;;  %s262_s19 = int_to_ptr.vmem [resolvable:$true] %s261_s19 }
  0x14   : > { %s841_s20 = scalar_lea.vmem %s246_s16, 256  ;;  %p849_p5 = scmp.lt.s32.totalorder %s246_s16, %s246_s16 }
  0x15   : > { %p1085_p11 = pnand %p762_p9, %p1253_p1  ;;  %p842_p13 = scmp.ne.s32.totalorder %s246_s16, %s841_s20 }
  0x16   : > { %p850_p7 = scmp.lt.s32.totalorder %s841_s20, %s841_s20 }
  0x17   : > { %p832_p12 = pneg %p1085_p11 }
  0x18   : > { %p851_p10 = por %p850_p7, %p849_p5 }
  0x19   : > { %p844_p0 = pnand %p842_p13, %p832_p12 }
  0x1b   : > { %p845_p3 = pneg %p844_p0 }
  0x1d   : > { %p852_p9 = pnand %p851_p10, %p845_p3 }
  0x1f   : > { %855 = shalt.err (!%p852_p9)
}
  0x20   : > { %s1252_s21 = smov 64   ;;  %s1254_s22 = smov 4  }
  0x21   : > { %s1263_s2 = sld [smem:[#allocation13_spill]]  ;;  %s867_s25 = scalar_lea.vmem %s262_s19, 192 }
  0x22   : > { %p868_p13 = scmp.ne.s32.totalorder %s262_s19, %s867_s25  ;;  %p875_p10 = scmp.lt.s32.totalorder %s262_s19, %s262_s19 }
  0x23   : > { %p876_p3 = scmp.lt.s32.totalorder %s867_s25, %s867_s25 }
  0x24   : > { %p870_p0 = pnand %p868_p13, %p832_p12 }
  0x25   : > { %p877_p7 = por %p876_p3, %p875_p10 }
  0x26   : > { %p871_p5 = pneg %p870_p0 }
  0x27   : > { %765 = dma.hbm_to_vmem [thread:$0]  (!%p1085_p11), %s1263_s2, 256, %s246_s16, [#allocation7], %s1252_s21, %s1252_s21, %s1254_s22  }
  0x28   : > { %p878_p9 = pnand %p877_p7, %p871_p5 }
  0x2a   : > { %881 = shalt.err (!%p878_p9)
}
  0x2b   : > { %768 = dma.hbm_to_vmem [thread:$0]  (!%p1085_p11), %s1247_s4, 192, %s262_s19, [#allocation7], %s1252_s21, %s1252_s21, %s1254_s22  }
  0x2c   : > { %s1114_s28 = sadd.s32 1, %s978_s10   ;;  %s33_s11 = sadd.s32 1, %s974_s9 }
  0x2d   : > { %s30_s15 = ssub.s32 %s978_s10, %s1114_s28  ;;  %p40_p12 = scmp.ne.s32.totalorder %s974_s9, %s970_s30 }
  0x2e   : > { %p31_p13 = scmp.eq.s32.totalorder %s30_s15, 0  ;;  %p41_p0 = scmp.eq.s32.totalorder %s978_s10, 0 }
  0x2f   : > { %p1124_p5 = por %p217_p2, %p40_p12  ;;  %p779_p10 = scmp.lt.s32.totalorder %s978_s10, 2 }
  0x30   : > { %s1130_s17 = scalar_select %p31_p13, %s974_s9, %s33_s11  }
  0x31   : > { %s1264_s16 = scalar_select %p1124_p5, 1, 0 }
  0x32   : > { %p42_p3 = por %p41_p0, %p40_p12  ;;  %s284_s18 = sand.u32 1, %s974_s9  }
  0x33   : > { %s696_s20 = sshll.u32 %s284_s18, 3  ;;  %s717_s19 = sshll.u32 %s978_s10, 7 }
  0x34   : > { %s1137_s25 = scalar_lea.hbm %s1243_s0, %s717_s19  ;;  %s288_s26 = scalar_lea.vmem [#allocation3], %s696_s20 }
  0x35   : > { %s295_s27 = sshll.u32 %s288_s26, 4  ;;  %p1141_p2 = pnand %p779_p10, %p42_p3  ;;  %s1139_s27 = int_to_ptr.vmem [resolvable:$true] %s295_s27 }
  0x36   : > { %s1145_s11 = scalar_lea.sflag [#allocation4], %s284_s18  ;;  %s882_s21 = scalar_lea.hbm %s1137_s25, 128 }
  0x37   : > { %p883_p11 = scmp.ne.s32.totalorder %s1137_s25, %s882_s21  ;;  %p884_p7 = pneg %p1141_p2 }
  0x38   : > { %s887_s20 = scalar_lea.hbm %s1243_s0, 256  ;;  %p888_p13 = scmp.lt.s32.totalorder %s1137_s25, %s1243_s0 }
  0x39   : > { %p885_p9 = pnand %p884_p7, %p883_p11  ;;  %p889_p0 = scmp.lt.s32.totalorder %s887_s20, %s882_s21 }
  0x3b   : > { %p886_p12 = pneg %p885_p9  ;;  %p890_p10 = por %p889_p0, %p888_p13 }
  0x3d   : > { %p891_p3 = pnand %p890_p10, %p886_p12 }
  0x3f   : > { %894 = shalt.err (!%p891_p3)
}
  0x40   : > { %s895_s18 = scalar_lea.vmem %s1139_s27, 128  ;;  %s984_s22 = smov [#allocation3]  }
  0x41   : > { %p896_p1 = scmp.ne.s32.totalorder %s1139_s27, %s895_s18  ;;  %s900_s2 = sshll.u32 %s984_s22, 4  ;;  %s901_s2 = int_to_ptr.vmem [resolvable:$false] %s900_s2 }
  0x42   : > { %s902_s19 = scalar_lea.vmem %s901_s2, 256  ;;  %p903_p9 = scmp.lt.s32.totalorder %s1139_s27, %s901_s2 }
  0x43   : > { %p898_p6 = pnand %p896_p1, %p884_p7  ;;  %p904_p5 = scmp.lt.s32.totalorder %s902_s19, %s895_s18 }
  0x45   : > { %p899_p11 = pneg %p898_p6  ;;  %p905_p4 = por %p904_p5, %p903_p9 }
  0x47   : > { %p906_p8 = pnand %p905_p4, %p899_p11 }
  0x49   : > { %909 = shalt.err (!%p906_p8)
}
  0x4a   : > { %s1266_s21 = smov 4   ;;  %s1267_s23 = smov 64  }
  0x4b   : > { %772 = dma.hbm_to_vmem [thread:$0]  (!%p1141_p2), %s1137_s25, 128, %s1139_s27, %s1145_s11, %s1267_s23, %s1267_s23, %s1266_s21  }
  0x4c   : > { %p1268_p1 = scmp.ne.s32.totalorder %s1261_s14, 0 }
  0x4d   : > { %s1172_s22 = sand.u32 (!%p1268_p1), 1, %s970_s30   ;;  %p1269_p4 = scmp.ne.s32.totalorder (!%p1268_p1), %s1259_s12, 0 }
  0x4e   : > { %307 = sbr.rel (%p1268_p1) target bundleno = 825 (0x339), region = 52  ;;  %s700_s2 = sshll.u32 (!%p1268_p1), %s1172_s22, 3 }
  0x4f   : > { %s310_s20 = scalar_lea.sflag (!%p1268_p1), [#allocation4], %s1172_s22  ;;  %s313_s24 = scalar_lea.vmem (!%p1268_p1), [#allocation3], %s700_s2 }
  0x53   : > { %953 = dma.done.wait (%p1269_p4), %s310_s20, 128  }
  0x54   : > { %955 = vsyncadd (%p1269_p4), %s310_s20, 4294967168  ;;  %p1270_p6 = scmp.eq.s32.totalorder %s1057_s7, 0 }
  0x56   : > { %957 = dma.done.wait (%p1270_p6), [#allocation7], 448   ;;  %p1271_p8 = pmov %p1270_p6 }
  0x57   : > { %v985_v0 = vmov 0.0   ;;  %vm986_vm0 = vmmov 0   ;;  %v821_v1 = vld [vmem:[#allocation6 + $0x8] sm:$0xff]   ;;  %v822_v2 = vld [vmem:[#allocation6] sm:$0xff]   ;;  %vm451_vm1 = vcmask 1043456   ;;  %s431_s25 = scalar_lea.vmem %s1244_s1, %s1057_s7  ;;  %v824_v5 = vld [vmem:[%s313_s24] sm:$0xff]  }
  0x58   : > { %959 = vsyncadd (%p1271_p8), [#allocation7], 4294966848  ;;  %727 = vmatprep.subr.bf16.mxu0 %v985_v0  ;;  %735 = vmatprep.subr.bf16.mxu1 %v985_v0  ;;  %v823_v3 = vld [vmem:[#allocation8 + $0x8] ss:$0 sps:$4 sm:$0xff]   ;;  %v825_v6 = vld [vmem:[#allocation8] sm:$0xff]   ;;  %vm384_vm2 = vcmask 261120  }
  0x59   : > { %731 = vmatprep.mubr.msk.bf16.mxu0 %vm986_vm0, %v985_v0  ;;  %739 = vmatprep.mubr.msk.bf16.mxu1 %vm986_vm0, %v985_v0  ;;  %v453_v4 = vsel %vm451_vm1, %v823_v3, 0  ;;  %v432_v7 = vld [vmem:[%s431_s25] sm:$0x1]  ;;  %vm447_vm3 = vcmask 195584   ;;  %s498_s21 = sld [smem:[#allocation2]]  ;;  %vm579_vm4 = vcmask 122880  }
  0x5a   : > { %728 = vmatpush3.bf16.msra.mxu0 %v821_v1  ;;  %736 = vmatpush3.bf16.msra.mxu1 %v453_v4  ;;  %v433_v8 = vpack.c.bf16 %v432_v7, %v432_v7  ;;  %v437_v10 = vld [vmem:[%s1248_s5] sm:$0x1]  ;;  %s714_s23 = sshll.u32 %s1057_s7, 4  ;;  %s352_s2 = scalar_lea.vmem [#allocation9], %s1172_s22 }
  0x5b   : > { %729 = vmatprep.subr.bf16.mxu0 %v985_v0  ;;  %737 = vmatprep.subr.bf16.mxu1 %v985_v0  ;;  %v703_v13 = vld [vmem:[%s1246_s3] ss:$0 sm:$0xff]  ;;  %s605_s20 = sshll.u32 %s352_s2, 4  ;;  %s603_s14 = scalar_lea.hbm %s1251_s8, %s714_s23  ;;  %s606_s20 = int_to_ptr.vmem [resolvable:$true] %s605_s20 }
  0x5c   : > { %v496_v23 = vld [vmem:[%s1249_s6] sm:$0x1]  ;;  %s593_s25 = scalar_lea.sflag [#allocation5], %s1172_s22  ;;  %s910_s27 = scalar_lea.vmem %s606_s20, 16 }
  0x5d   : > { %p911_p5 = scmp.ne.s32.totalorder %s606_s20, %s910_s27  ;;  %p1272_p2 = scmp.ne.s32.totalorder %s1264_s16, 0 }
  0x5e   : > { %730 = vmatpush3.bf16.msra.mxu0 %v822_v2  ;;  %738 = vmatpush3.bf16.msra.mxu1 %v825_v6  ;;  %s987_s15 = smov [#allocation9]  }
  0x5f   : > { %743 = vmatprep.subr.mxu0 %v985_v0  ;;  %v499_v27 = vstv %s498_s21  ;;  %p912_p7 = pnand %p911_p5, %p1272_p2  ;;  %s914_s11 = sshll.u32 %s987_s15, 4  ;;  %s915_s11 = int_to_ptr.vmem [resolvable:$false] %s914_s11 }
  0x60   : > { %s916_s7 = scalar_lea.vmem %s915_s11, 32  ;;  %p917_p13 = scmp.lt.s32.totalorder %s606_s20, %s915_s11 }
  0x61   : > { %732 = vmatmul.mubr.msk.bf16.vlgmr.msra.gmra.mxu0 %vm384_vm2, %v824_v5  ;;  %740 = vmatmul.mubr.msk.bf16.vlgmr.msra.gmra.mxu1 %vm447_vm3, %v433_v8  ;;  %p913_p12 = pneg %p912_p7  ;;  %p918_p0 = scmp.lt.s32.totalorder %s916_s7, %s910_s27 }
  0x62   : > { %747 = vmatprep.mubr.msk.f32.mxu0 %vm986_vm0, %v985_v0 }
  0x63   : > { %p919_p10 = por %p918_p0, %p917_p13 }
  0x65   : > { %p920_p3 = pnand %p919_p10, %p913_p12 }
 0x121   : > { %v422_v9 = vpop.f32.mrf.mxu0  ;;  %v489_v12 = vpop.f32.mrf.mxu1 }
 0x122   : > { %v490_v15 = vadd.f32 %v489_v12, %v437_v10  ;;  %v423_v19 = vadd.f32 %v703_v13, %v422_v9 }
 0x123   : > { %v733_v11 = vpop.f32.mrf.mxu0  ;;  %v741_v17 = vpop.f32.mrf.mxu1 }
 0x124   : > { %v495_v22 = vmax.f32 %v490_v15, 0.0  ;;  %v429_v25 = vmax.f32 %v423_v19, 0.0 }
 0x125   : > { %v425_v14 = vpop.f32.mrf.mxu0  ;;  %v492_v21 = vpop.f32.mrf.mxu1 }
 0x126   : > { %v426_v16 = vadd.f32 %v703_v13, %v425_v14  ;;  %v497_v26 = vmul.f32 %v496_v23, %v495_v22 }
 0x127   : > { %v734_v18 = vpop.f32.mrf.mxu0  ;;  %v742_v24 = vpop.f32.mrf.mxu1 }
 0x128   : > { %v430_v20 = vmax.f32 %v426_v16, 0.0 }
 0x12a   : > { %744 = vmatpush3.xpose.msk.msra.mxu0 %vm384_vm2, %v430_v20 }
 0x12b   : > { %745 = vmatprep.subr.mxu0 %v985_v0 }
 0x12e   : > { %746 = vmatpush3.xpose.msk.msra.mxu0 %vm384_vm2, %v429_v25 }
 0x131   : > { %748 = vmatmul.mubr.msk.f32.vlgmr.msra.gmra.mxu0 %vm384_vm2, %v497_v26 }
 0x1f1   : > { %v575_v28 = vpop.f32.mrf.mxu0 }
 0x1f2   : > { %v576_v29 = vadd.f32 %v575_v28, %v499_v27 }
 0x1f3   : > { %v749_v30 = vpop.f32.mrf.mxu0 }
 0x1f4   : > { %v580_v31 = vsel %vm579_vm4, %v576_v29, -inf }
 0x1f5   : > { %581 = vmax.xlane.f32.xlu0 %v580_v31 }
 0x27e   : > { %v582_v32 = vpop.xlane.xlu0 %581 }
 0x27f   : > { %v583_v33 = vsub.f32 %v576_v29, %v582_v32 }
 0x281   : > { %v584_v34 = vmul.f32 1.442695, %v583_v33 }
 0x283   : > { %826 = vpow2.f32 %v584_v34 }
 0x290   : > { %v827_v35 = vpop.eup %826 }
 0x291   : > { %v586_v36 = vsel %vm579_vm4, %v827_v35, 0.0 }
 0x292   : > { %587 = vadd.xlane.f32.xlu0 %v586_v36 }
 0x31b   : > { %v588_v37 = vpop.xlane.xlu0 %587 }
 0x31c   : > { %828 = vrcp.f32 %v588_v37 }
 0x329   : > { %v829_v38 = vpop.eup %828 }
 0x32a   : > { %v590_v39 = vmul.f32 %v829_v38, %v827_v35 }
 0x32c   : > { %591 = vst.msk [vmem:[%s352_s2] sm:$0x1] %vm579_vm4, %v590_v39 }
 0x32d   : > { %923 = shalt.err (!%p920_p3)
}
 0x32e   : > { %s924_s26 = scalar_lea.hbm %s603_s14, 16  ;;  %s928_s19 = scalar_lea.hbm %s1251_s8, 32 }
 0x32f   : > { %p925_p11 = scmp.ne.s32.totalorder %s603_s14, %s924_s26  ;;  %p929_p4 = scmp.lt.s32.totalorder %s603_s14, %s1251_s8 }
 0x330   : > { %p930_p6 = scmp.lt.s32.totalorder %s928_s19, %s924_s26 }
 0x331   : > { %p926_p9 = pnand %p925_p11, %p1272_p2 }
 0x332   : > { %p931_p8 = por %p930_p6, %p929_p4 }
 0x333   : > { %p927_p1 = pneg %p926_p9 }
 0x335   : > { %p932_p5 = pnand %p931_p8, %p927_p1 }
 0x337   : > { %935 = shalt.err (!%p932_p5)
}
 0x338   : > { %760 = dma.vmem_to_hbm [thread:$0]  (%p1272_p2), %s606_s20, 16, %s603_s14, %s593_s25  }
 0x339 PF: > { %s617_s2 = sand.u32 1, %s966_s29   ;;  %p1273_p7 = scmp.ne.s32.totalorder %s1260_s13, 0 }
 0x33a   : > { %p1274_p12 = scmp.ge.s32.totalorder %s978_s10, 2  ;;  %s618_s24 = scalar_lea.sflag [#allocation5], %s617_s2 }
 0x33c   : > { %p774_p13 = pnand %p1274_p12, %p1273_p7 }
 0x33e   : > { %p775_p0 = pneg %p774_p13 }
 0x340   : > { %961 = dma.done.wait (%p775_p0), %s618_s24, 16  }
 0x341   : > { %963 = vsyncadd (%p775_p0), %s618_s24, 4294967280  ;;  %p23_p10 = scmp.ge.s32.totalorder %s1114_s28, 4   ;;  %s1275_s29 = smov %s970_s30 }
 0x342   : > { %s1276_s30 = smov %s974_s9  ;;  %s1277_s9 = smov %s1130_s17 }
 0x343   : > { %s1278_s10 = smov %s1114_s28  ;;  %25 = sbr.rel (!%p23_p10) target bundleno = 9 (0x9), region = 106 }
 0x348   :  { %622 = vsyncpa [#allocation4], 1 }
 0x349   :  { %624 = vsyncpa [#allocation4 + $0x1], 1 }
 0x34a   :  { %625 = vsyncpa [#allocation7], 1 }
 0x34b   :  { %626 = vsyncpa [#allocation5], 1 }
 0x34c   :  { %628 = vsyncpa [#allocation5 + $0x1], 1 }

</bundles_post_ra>
